<compile_context>
chip_gen: v7x
topology: tpu7x:2x2x1
jax: 0.10.0
libtpu: 0.0.40
codegen_flags: <defaults>
</compile_context>

<pallas_src>
import jax
import jax.numpy as jnp
import numpy as np
from jax.experimental import pallas as pl
from jax.experimental.pallas import tpu as pltpu


def graph_conv_bn_relu_kernel(x_ref, adj_ref, wgb_ref, o_ref):
    # x_ref:   (B*J, Cin)      activations, batch*nodes flattened onto sublanes
    # adj_ref: (J, J)          shared normalized adjacency (NOT block-diagonal)
    # wgb_ref: (Cin+2, Cout)   rows 0:Cin = W, row Cin = gamma, row Cin+1 = beta
    # o_ref:   (B*J, Cout)
    bj, cin = x_ref.shape
    j = adj_ref.shape[0]
    b = bj // j

    x = x_ref[...]
    adj = adj_ref[...]
    w = wgb_ref[0:cin, :]                       # (Cin, Cout)
    gamma = wgb_ref[cin:cin + 1, :]             # (1, Cout)
    beta = wgb_ref[cin + 1:cin + 2, :]          # (1, Cout)

    # ---- graph convolution ----
    # Feature transform for all batch rows at once: one MXU dot.
    h = jnp.dot(x, w, preferred_element_type=jnp.float32)            # (B*J, Cout)
    # Neighborhood aggregation with the shared (J, J) adjacency, statically unrolled
    # over the (small) batch.  No block-diagonal expansion, no batch transposes.
    y_parts = []
    for bi in range(b):
        hb = h[bi * j:(bi + 1) * j, :]                                # (J, Cout)
        y_parts.append(jnp.dot(adj, hb, preferred_element_type=jnp.float32))
    y = jnp.concatenate(y_parts, axis=0)                              # (B*J, Cout)
    # NOTE: gconv bias omitted on purpose - cancelled exactly by the BN mean subtraction.

    # ---- BatchNorm1d (training-mode batch stats), single fused reduction pass ----
    cout = y.shape[1]
    inv_n = 1.0 / y.shape[0]
    stats = jnp.sum(jnp.concatenate([y, y * y], axis=1),
                    axis=0, keepdims=True) * inv_n                    # (1, 2*Cout)
    mean = stats[:, :cout]                                            # (1, Cout)
    mean_sq = stats[:, cout:]                                         # (1, Cout)
    var = jnp.maximum(mean_sq - mean * mean, 0.0)                     # biased var, clamped
    scale = gamma * jax.lax.rsqrt(var + 1e-5)                         # (1, Cout)
    shift = beta - mean * scale                                       # (1, Cout)

    # ---- affine + ReLU fused ----
    o_ref[...] = jnp.maximum(y * scale + shift, 0.0).astype(o_ref.dtype)


def pack_params(w, gamma, beta):
    """Call once at module-init time (hoisted out of the per-forward path)."""
    return jnp.concatenate([w, gamma[None, :], beta[None, :]], axis=0)   # (Cin+2, Cout)


def graph_conv_forward(x, adj, wgb):
    """x: (B, J, Cin), adj: (J, J), wgb: (Cin+2, Cout)  ->  (B, J, Cout)."""
    B, J, Cin = x.shape
    Cout = wgb.shape[1]

    x2 = x.reshape(B * J, Cin)                                       # free contiguous reshape

    flops = 2 * B * J * Cin * Cout + 2 * B * J * J * Cout
    bytes_accessed = 4 * (B * J * Cin + J * J + (Cin + 2) * Cout + B * J * Cout)
    vmem = pl.BlockSpec(memory_space=pltpu.MemorySpace.VMEM)

    out2 = pl.pallas_call(
        graph_conv_bn_relu_kernel,
        out_shape=jax.ShapeDtypeStruct((B * J, Cout), x.dtype),
        in_specs=[vmem, vmem, vmem],
        out_specs=vmem,
        cost_estimate=pl.CostEstimate(
            flops=flops, transcendentals=Cout, bytes_accessed=bytes_accessed),
    )(x2, adj, wgb)
    return out2.reshape(B, J, Cout)


def reference_forward(x, adj, w, b, gamma, beta):
    """Faithful to the PyTorch module in training mode (includes the gconv bias; BN cancels it)."""
    h = jnp.einsum('bjc,cd->bjd', x, w)
    y = jnp.einsum('jk,bkd->bjd', adj, h) + b[None, None, :]
    mean = jnp.mean(y, axis=(0, 1), keepdims=True)
    var = jnp.mean((y - mean) ** 2, axis=(0, 1), keepdims=True)
    y_bn = (y - mean) * jax.lax.rsqrt(var + 1e-5) * gamma[None, None, :] + beta[None, None, :]
    return jnp.maximum(y_bn, 0.0)


if __name__ == "__main__":
    B, J, Cin, Cout = 2, 16, 32, 32

    key = jax.random.PRNGKey(0)
    kx, kw, kb, kg, kbe = jax.random.split(key, 5)

    x = jax.random.normal(kx, (B, J, Cin), dtype=jnp.float32)

    # Deterministic normalized adjacency: chain graph + self-loops, D^-1/2 (A+I) D^-1/2.
    # (Constant per module; computed once, outside the forward path.)
    A = jnp.eye(J, dtype=jnp.float32)
    idx = jnp.arange(J - 1)
    A = A.at[idx, idx + 1].set(1.0)
    A = A.at[idx + 1, idx].set(1.0)
    deg = A.sum(axis=1)
    d_inv_sqrt = 1.0 / jnp.sqrt(deg)
    adj = A * d_inv_sqrt[:, None] * d_inv_sqrt[None, :]

    w = 0.1 * jax.random.normal(kw, (Cin, Cout), dtype=jnp.float32)
    b = 0.1 * jax.random.normal(kb, (Cout,), dtype=jnp.float32)
    gamma = 1.0 + 0.1 * jax.random.normal(kg, (Cout,), dtype=jnp.float32)
    beta = 0.1 * jax.random.normal(kbe, (Cout,), dtype=jnp.float32)

    # Module-init-time packing (not part of the per-forward path).
    wgb = pack_params(w, gamma, beta)

    out = graph_conv_forward(x, adj, wgb)
    out = jax.block_until_ready(out)

    ref = reference_forward(x, adj, w, b, gamma, beta)
    np.testing.assert_allclose(np.asarray(out), np.asarray(ref), rtol=1e-4, atol=2e-5)

    print("KERNEL_OK")
</pallas_src>

<mosaic_0001>
module attributes {stable_mosaic.version = 11 : i64} {
  func.func @graph_conv_bn_relu_kernel(%arg0: memref<32x32xf32, #tpu.memory_space<vmem>>, %arg1: memref<16x16xf32, #tpu.memory_space<vmem>>, %arg2: memref<34x32xf32, #tpu.memory_space<vmem>>, %arg3: memref<32x32xf32, #tpu.memory_space<vmem>>) attributes {dimension_semantics = [], scalar_prefetch = 0 : i64, scratch_operands = 0 : i64, tpu.core_type = #tpu.core_type<tc>} {
    %c0 = arith.constant 0 : index
    %c0_0 = arith.constant 0 : index
    %0 = vector.load %arg0[%c0, %c0_0] : memref<32x32xf32, #tpu.memory_space<vmem>>, vector<32x32xf32>
    %c0_1 = arith.constant 0 : index
    %c0_2 = arith.constant 0 : index
    %1 = vector.load %arg1[%c0_1, %c0_2] : memref<16x16xf32, #tpu.memory_space<vmem>>, vector<16x16xf32>
    %c0_3 = arith.constant 0 : index
    %c0_4 = arith.constant 0 : index
    %2 = vector.load %arg2[%c0_3, %c0_4] : memref<34x32xf32, #tpu.memory_space<vmem>>, vector<32x32xf32>
    %c32 = arith.constant 32 : index
    %c0_5 = arith.constant 0 : index
    %3 = vector.load %arg2[%c32, %c0_5] : memref<34x32xf32, #tpu.memory_space<vmem>>, vector<1x32xf32>
    %c33 = arith.constant 33 : index
    %c0_6 = arith.constant 0 : index
    %4 = vector.load %arg2[%c33, %c0_6] : memref<34x32xf32, #tpu.memory_space<vmem>>, vector<1x32xf32>
    %cst = arith.constant dense<0.000000e+00> : vector<32x32xf32>
    %5 = tpu.matmul %0, %2, %cst {dimension_numbers = #tpu.dot_dimension_numbers<[1], [0], [0], [1], [0, 0, 1, 1], [], []>} : vector<32x32xf32>, vector<32x32xf32>, vector<32x32xf32> -> vector<32x32xf32>
    %6 = vector.extract_strided_slice %5 {offsets = [0, 0], sizes = [16, 32], strides = [1, 1]} : vector<32x32xf32> to vector<16x32xf32>
    %cst_7 = arith.constant dense<0.000000e+00> : vector<16x32xf32>
    %7 = tpu.matmul %1, %6, %cst_7 {dimension_numbers = #tpu.dot_dimension_numbers<[1], [0], [0], [1], [0, 0, 1, 1], [], []>} : vector<16x16xf32>, vector<16x32xf32>, vector<16x32xf32> -> vector<16x32xf32>
    %8 = vector.extract_strided_slice %5 {offsets = [16, 0], sizes = [16, 32], strides = [1, 1]} : vector<32x32xf32> to vector<16x32xf32>
    %cst_8 = arith.constant dense<0.000000e+00> : vector<16x32xf32>
    %9 = tpu.matmul %1, %8, %cst_8 {dimension_numbers = #tpu.dot_dimension_numbers<[1], [0], [0], [1], [0, 0, 1, 1], [], []>} : vector<16x16xf32>, vector<16x32xf32>, vector<16x32xf32> -> vector<16x32xf32>
    %10 = tpu.concatenate %7, %9 in 0 : vector<16x32xf32>, vector<16x32xf32> -> vector<32x32xf32>
    %11 = arith.mulf %10, %10 : vector<32x32xf32>
    %12 = tpu.concatenate %10, %11 in 1 : vector<32x32xf32>, vector<32x32xf32> -> vector<32x64xf32>
    %cst_9 = arith.constant dense<0.000000e+00> : vector<64xf32>
    %13 = vector.multi_reduction <add>, %12, %cst_9 [0] : vector<32x64xf32> to vector<64xf32>
    %14 = vector.shape_cast %13 : vector<64xf32> to vector<1x64xf32>
    %cst_10 = arith.constant 3.125000e-02 : f32
    %15 = vector.broadcast %cst_10 : f32 to vector<1x64xf32>
    %16 = arith.mulf %14, %15 : vector<1x64xf32>
    %17 = vector.extract_strided_slice %16 {offsets = [0, 0], sizes = [1, 32], strides = [1, 1]} : vector<1x64xf32> to vector<1x32xf32>
    %18 = vector.extract_strided_slice %16 {offsets = [0, 32], sizes = [1, 32], strides = [1, 1]} : vector<1x64xf32> to vector<1x32xf32>
    %19 = arith.mulf %17, %17 : vector<1x32xf32>
    %20 = arith.subf %18, %19 : vector<1x32xf32>
    %cst_11 = arith.constant 0.000000e+00 : f32
    %21 = vector.broadcast %cst_11 : f32 to vector<1x32xf32>
    %22 = arith.maximumf %20, %21 : vector<1x32xf32>
    %cst_12 = arith.constant 9.99999974E-6 : f32
    %23 = vector.broadcast %cst_12 : f32 to vector<1x32xf32>
    %24 = arith.addf %22, %23 : vector<1x32xf32>
    %25 = math.rsqrt %24 : vector<1x32xf32>
    %26 = arith.mulf %3, %25 : vector<1x32xf32>
    %27 = arith.mulf %17, %26 : vector<1x32xf32>
    %28 = arith.subf %4, %27 : vector<1x32xf32>
    %29 = vector.broadcast %26 : vector<1x32xf32> to vector<32x32xf32>
    %30 = arith.mulf %10, %29 : vector<32x32xf32>
    %31 = vector.broadcast %28 : vector<1x32xf32> to vector<32x32xf32>
    %32 = arith.addf %30, %31 : vector<32x32xf32>
    %cst_13 = arith.constant 0.000000e+00 : f32
    %33 = vector.broadcast %cst_13 : f32 to vector<32x32xf32>
    %34 = arith.maximumf %32, %33 : vector<32x32xf32>
    %c0_14 = arith.constant 0 : index
    %c0_15 = arith.constant 0 : index
    %35 = vector.load %arg3[%c0_14, %c0_15] : memref<32x32xf32, #tpu.memory_space<vmem>>, vector<32x32xf32>
    tpu.vector_store %arg3[%c0_14, %c0_15], %34 {strides = array<i32>} : memref<32x32xf32, #tpu.memory_space<vmem>>, vector<32x32xf32>,
    return
  }
}

</mosaic_0001>

<bundles_post_ra>
// kernel: tpu_custom_call.1
= control target key start
LH: loop header
LB: loop body
LE: loop exit
PB: predicated region body
PF: predicated region fallthrough
CT: control target
= control target key end

     0   :  { %vm27_vm0 = vcmask 261120   ;;  %s566_s0 = inlined_call_operand.vmem [shape: f32[32,32], index: 0, kind: input, shape index: {}]   ;;  %s567_s1 = inlined_call_operand.vmem [shape: f32[16,16], index: 1, kind: input, shape index: {}]   ;;  %s568_s2 = inlined_call_operand.vmem [shape: f32[34,32], index: 2, kind: input, shape index: {}]   ;;  %s569_s3 = inlined_call_operand.hbm [shape: f32[32,32], index: 3, kind: output, shape index: {}]  }
   0x1   :  { %v21_v0 = vld [vmem:[%s568_s2] sm:$0xff]  ;;  %v22_v1 = vld [vmem:[%s568_s2 + $0x8] sm:$0xff]  ;;  %v23_v2 = vld [vmem:[%s568_s2 + $0x10] sm:$0xff] }
   0x2   :  { %v429_v3 = vpack.c.bf16 %v22_v1, %v21_v0  ;;  %v24_v4 = vld [vmem:[%s568_s2 + $0x18] sm:$0xff]  ;;  %v15_v5 = vld [vmem:[%s566_s0] sm:$0xff] }
   0x3   :  { %v433_v6 = vpack.c.bf16 %v24_v4, %v23_v2  ;;  %409 = vmatprep.mubr.msk.f32.mxu0 %vm27_vm0, %v15_v5 }
   0x4   :  { %8 = vsyncpa [#allocation3], 0  ;;  %430 = vmatprep.subr.bf16.mxu0 %v429_v3  ;;  %v16_v7 = vld [vmem:[%s566_s0 + $0x8] sm:$0xff]  ;;  %v17_v8 = vld [vmem:[%s566_s0 + $0x10] sm:$0xff]  ;;  %vm125_vm1 = vcmask 130048   ;;  %vm306_vm2 = vcmask 523264   ;;  %v337_v54 = vlaneseq }
   0x5   :  { %432 = vmatpush3.bf16.msra.mxu0 %v429_v3  ;;  %v18_v9 = vld [vmem:[%s566_s0 + $0x18] sm:$0xff]  ;;  %v19_v10 = vld [vmem:[%s567_s1] sm:$0xff]  ;;  %v20_v16 = vld [vmem:[%s567_s1 + $0x8] sm:$0xff]  ;;  %s476_s0 = smov 32   ;;  %s477_s1 = smov 96  }
   0x6   :  { %434 = vmatprep.subr.bf16.mxu0 %v433_v6  ;;  %419 = vmatprep.mubr.msk.f32.mxu1 %vm125_vm1, %v19_v10  ;;  %v338_v55 = vshrl.u32 %v337_v54, 7  ;;  %v25_v56 = vld [vmem:[%s568_s2 + $0x20] sm:$0x1]  ;;  %v26_v60 = vld [vmem:[%s568_s2 + $0x21] sm:$0x1]  ;;  %s478_s9 = smov [#allocation2]  }
   0x7   :  { %s366_s10 = sshll.u32 %s478_s9, 4  ;;  %s367_s10 = int_to_ptr.vmem [resolvable:$true] %s366_s10 }
   0x8   :  { %v339_v57 = vsub.s32 0, %v338_v55  ;;  %s452_s2 = scalar_lea.vmem %s367_s10, 512  ;;  %p457_p1 = scmp.lt.s32.totalorder %s367_s10, %s367_s10 }
   0x9   :  { %436 = vmatpush3.bf16.msra.mxu0 %v433_v6  ;;  %p453_p0 = scmp.ne.s32.totalorder %s367_s10, %s452_s2  ;;  %p458_p2 = scmp.lt.s32.totalorder %s452_s2, %s452_s2 }
   0xb   :  { %p459_p3 = por %p458_p2, %p457_p1 }
   0xc   :  { %410 = vmatmul.mubr.msk.f32.vlgmr.msra.gmra.mrb[0].mxu0 %vm27_vm0, %v16_v7 }
   0xd   :  { %412 = vmatprep.mubr.msk.f32.mxu0 %vm27_vm0, %v17_v8  ;;  %p460_p4 = pnand %p459_p3, %p453_p0 }
  0x10   :  { %413 = vmatmul.mubr.msk.f32.gmra.mrb[2].mxu0 %vm27_vm0, %v18_v9 }
  0xdf   :  { %v411_v11 = vpop.f32.mrb[0].mxu0 }
  0xe0   :  { %v106_v12 = vpop.f32.mrb[1].mxu0 }
  0xe1   :  { %v437_v13 = vpack.c.bf16 %v411_v11, %v106_v12 }
  0xe3   :  { %v414_v14 = vpop.f32.mrb[2].mxu0  ;;  %438 = vmatprep.subr.bf16.mxu1 %v437_v13 }
  0xe4   :  { %v116_v15 = vpop.f32.mrb[3].mxu0  ;;  %440 = vmatpush3.bf16.msra.mxu1 %v437_v13 }
  0xe5   :  { %v441_v17 = vpack.c.bf16 %v414_v14, %v116_v15 }
  0xe7   :  { %420 = vmatmul.mubr.msk.f32.vlgmr.msra.gmra.mrb[0].mxu1 %vm125_vm1, %v20_v16  ;;  %442 = vmatprep.subr.bf16.mxu1 %v441_v17 }
  0xe8   :  { %444 = vmatpush3.bf16.msra.mxu1 %v441_v17  ;;  %426 = vmatprep.mubr.msk.f32.mxu1 %vm125_vm1, %v19_v10 }
  0xeb   :  { %427 = vmatmul.mubr.msk.f32.vlgmr.msra.gmra.mrb[2].mxu1 %vm125_vm1, %v20_v16 }
 0x1ba   :  { %v421_v18 = vpop.f32.mrb[0].mxu1 }
 0x1bb   :  { %v198_v19 = vpop.f32.mrb[1].mxu1  ;;  %v283_v23 = vmul.f32 %v421_v18, %v421_v18 }
 0x1bc   :  { %v282_v20 = vmul.f32 %v198_v19, %v198_v19 }
 0x1be   :  { %290 = vrot.lane.b32.xlu0 %v282_v20, %s476_s0  ;;  %v428_v21 = vpop.f32.mrb[2].mxu1 }
 0x1bf   :  { %v273_v22 = vpop.f32.mrb[3].mxu1  ;;  %v285_v25 = vmul.f32 %v428_v21, %v428_v21 }
 0x1c0   :  { %v284_v24 = vmul.f32 %v273_v22, %v273_v22 }
 0x1c2   :  { %292 = vrot.lane.b32.xlu0 %v283_v23, %s476_s0  ;;  %294 = vrot.lane.b32.xlu1 %v284_v24, %s476_s0 }
 0x1c6   :  { %296 = vrot.lane.b32.xlu1 %v285_v25, %s476_s0 }
 0x230   :  { %v291_v26 = vpop.permute.xlu0 %290 }
 0x231   :  { %v302_v27 = vsel %vm27_vm0, %v198_v19, %v291_v26 }
 0x232   :  { %v307_v32 = vsel %vm306_vm2, %v302_v27, 0.0 }
 0x234   :  { %v293_v28 = vpop.permute.xlu0 %292  ;;  %v295_v29 = vpop.permute.xlu1 %294 }
 0x235   :  { %v303_v30 = vsel %vm27_vm0, %v421_v18, %v293_v28  ;;  %v304_v31 = vsel %vm27_vm0, %v273_v22, %v295_v29 }
 0x236   :  { %v308_v33 = vsel %vm306_vm2, %v303_v30, 0.0  ;;  %v310_v35 = vsel %vm306_vm2, %v304_v31, 0.0 }
 0x237   :  { %v309_v34 = vadd.f32 %v308_v33, %v307_v32 }
 0x238   :  { %v297_v36 = vpop.permute.xlu1 %296 }
 0x239   :  { %v311_v37 = vadd.f32 %v310_v35, %v309_v34  ;;  %v305_v38 = vsel %vm27_vm0, %v428_v21, %v297_v36 }
 0x23a   :  { %v312_v39 = vsel %vm306_vm2, %v305_v38, 0.0 }
 0x23b   :  { %v313_v40 = vadd.f32 %v312_v39, %v311_v37 }
 0x23d   :  { %v314_v41 = vrot.slane %v313_v40, 4 }
 0x23f   :  { %v315_v42 = vadd.f32 %v314_v41, %v313_v40 }
 0x241   :  { %v316_v43 = vrot.slane %v315_v42, 2 }
 0x243   :  { %v317_v44 = vadd.f32 %v316_v43, %v315_v42 }
 0x245   :  { %v318_v45 = vrot.slane %v317_v44, 1 }
 0x247   :  { %v319_v46 = vadd.f32 %v318_v45, %v317_v44 }
 0x249   :  { %v320_v47 = vmul.f32 0.03125, %v319_v46 }
 0x24b   :  { %v321_v48 = vmul.f32 %v320_v47, %v320_v47 }
 0x24d   :  { %323 = vrot.lane.b32.xlu0 %v321_v48, %s476_s0 }
 0x2bf   :  { %v324_v49 = vpop.permute.xlu0 %323 }
 0x2c0   :  { %v326_v50 = vsub.f32 %v320_v47, %v324_v49 }
 0x2c2   :  { %v327_v51 = vmax.f32 %v326_v50, 0.0 }
 0x2c4   :  { %v328_v52 = vadd.f32 1e-05, %v327_v51 }
 0x2c6   :  { %450 = vrsqrt.f32 %v328_v52 }
 0x2d0   :  { %v451_v53 = vpop.eup %450 }
 0x2d1   :  { %331 = vrot.lane.b32.xlu1 %v451_v53, %s477_s1 }
 0x343   :  { %v332_v58 = vpop.permute.xlu1 %331 }
 0x344   :  { %v334_v59 = vmul.f32 %v332_v58, %v25_v56 }
 0x346   :  { %v335_v61 = vmul.f32 %v334_v59, %v320_v47  ;;  %v340_v62 = vrot.slane %v334_v59, %v339_v57 }
 0x348   :  { %v336_v63 = vsub.f32 %v26_v60, %v335_v61  ;;  %v341_v0 = vmul.f32 %v340_v62, %v198_v19  ;;  %v342_v1 = vmul.f32 %v421_v18, %v340_v62  ;;  %v343_v2 = vmul.f32 %v340_v62, %v273_v22 }
 0x349   :  { %v344_v3 = vmul.f32 %v428_v21, %v340_v62 }
 0x34a   :  { %v348_v4 = vrot.slane %v336_v63, %v339_v57 }
 0x34c   :  { %v349_v5 = vadd.f32 %v348_v4, %v341_v0  ;;  %v350_v6 = vadd.f32 %v348_v4, %v342_v1  ;;  %v351_v7 = vadd.f32 %v348_v4, %v343_v2  ;;  %v352_v8 = vadd.f32 %v348_v4, %v344_v3 }
 0x34e   :  { %v353_v9 = vmax.f32 %v349_v5, 0.0  ;;  %v354_v10 = vmax.f32 %v350_v6, 0.0  ;;  %v355_v11 = vmax.f32 %v351_v7, 0.0  ;;  %v356_v12 = vmax.f32 %v352_v8, 0.0 }
 0x350   :  { %357 = vst.msk [vmem:[#allocation2] sm:$0xff] %vm27_vm0, %v353_v9  ;;  %358 = vst.msk [vmem:[#allocation2 + $0x8] sm:$0xff] %vm27_vm0, %v354_v10 }
 0x351   :  { %359 = vst.msk [vmem:[#allocation2 + $0x10] sm:$0xff] %vm27_vm0, %v355_v11  ;;  %360 = vst.msk [vmem:[#allocation2 + $0x18] sm:$0xff] %vm27_vm0, %v356_v12 }
 0x352   :  { %463 = shalt.err (!%p460_p4)
}
 0x353   :  { %s464_s13 = scalar_lea.hbm %s569_s3, 512 }
 0x354   :  { %p465_p5 = scmp.ne.s32.totalorder %s569_s3, %s464_s13  ;;  %p468_p6 = scmp.lt.u32.totalorder %s464_s13, %s569_s3 }
 0x356   :  { %p470_p7 = pnand %p468_p6, %p465_p5 }
 0x358   :  { %473 = shalt.err (!%p470_p7)
}
 0x359   :  { %s479_s18 = smov 128   ;;  %s480_s19 = smov 8  }
 0x35a   :  { %372 = dma.vmem_to_hbm [thread:$0]  %s367_s10, 512, %s569_s3, [#allocation3], %s479_s18, %s479_s18, %s480_s19  }
 0x35b   :  { %474 = dma.done.wait [#allocation3], 512  }
 0x35c   :  { %475 = vsyncadd [#allocation3], 4294966784 }
 0x35d   :  { %376 = vsyncpa [#allocation3], 1 }

</bundles_post_ra>
